<compile_context>
chip_gen: v7x
topology: tpu7x:2x2x1
jax: 0.10.0
libtpu: 0.0.40
codegen_flags: <defaults>
</compile_context>

<pallas_src>
import functools

import jax
import jax.numpy as jnp
from jax.experimental import pallas as pl
from jax.experimental.pallas import tpu as pltpu

SMOOTH = 1.0
CE_W0 = 1.0
CE_W1 = 1.0
_W_SUM = CE_W0 + CE_W1
_W_DIFF = CE_W0 - CE_W1

_LANES = 128
_SUBLANES = 8


def _chip_defaults():
    """Pick block size / VMEM budget / TensorCore split from the local chip."""
    vmem_cap = 128 * 1024 * 1024
    try:
        vmem_cap = int(pltpu.get_tpu_info().vmem_capacity_bytes)
    except Exception:
        pass
    if vmem_cap <= 64 * 1024 * 1024:
        # v7x-class: 64 MiB VMEM per TC, 2 TensorCores -> smaller blocks, 2-way split.
        # TODO(synk): verify via xprof that the "parallel" axis shards across both TCs;
        # switch to a core_map / CORE_PARALLEL split if it serializes.
        return dict(n_split=2, block_bytes=1 << 20, vmem_limit=48 << 20)
    # v5e / v6e: 128 MiB VMEM, a single TensorCore -> bigger blocks, no split.
    return dict(n_split=1, block_bytes=2 << 20, vmem_limit=64 << 20)


def _fold8(v):
    """Partial-reduce an (N, R, 128) f32 array (N*R % 8 == 0) to one (8, 128) tile.

    The reshape keeps (8,128) vreg tiles intact and the reduction runs over a
    non-minor axis, so this lowers to plain VPU vreg adds (no cross-lane XLU work).
    """
    return jnp.sum(v.reshape(-1, _SUBLANES, _LANES), axis=0)


def _combined_loss_kernel(x_ref, t_ref, out_ref, *, n_channels, tile_rows,
                          n_tiles_per_split, hw_valid, needs_mask, w_sum, w_diff):
    j = pl.program_id(1)

    # Output block index is constant along the "arbitrary" axis -> VMEM-resident
    # across the whole j loop: use it directly as the accumulator.
    @pl.when(j == 0)
    def _():
        out_ref[...] = jnp.zeros_like(out_ref)

    x = x_ref[...].astype(jnp.float32)   # (N, C, tile_rows, 128)
    t = t_ref[...].astype(jnp.float32)

    mask = None
    if needs_mask:
        # Valid iff the flat per-plane pixel index is < H*W.  Covers: partial tail
        # blocks (undefined data), padded lanes (rare), and fully-duplicate clamped
        # tiles from an uneven TensorCore split.  Zeroing the inputs keeps every
        # downstream value finite at invalid positions.
        flat_tile = pl.program_id(0) * n_tiles_per_split + j
        row0 = flat_tile * tile_rows
        r_idx = jax.lax.broadcasted_iota(jnp.int32, (tile_rows, _LANES), 0)
        l_idx = jax.lax.broadcasted_iota(jnp.int32, (tile_rows, _LANES), 1)
        mask = (row0 + r_idx) * _LANES + l_idx < hw_valid
        x = jnp.where(mask, x, 0.0)
        t = jnp.where(mask, t, 0.0)

    # Channel softmax pieces. Axis 1 (channels) is non-minor -> pure VPU slab ops.
    m = jnp.max(x, axis=1, keepdims=True)
    x = x - m                                      # shifted logits (reuses x)
    e = jnp.exp(x)
    sum_e = jnp.sum(e, axis=1, keepdims=True)
    log_sum = jnp.log(sum_e)[:, 0]                 # (N, tile_rows, 128)
    inv = pl.reciprocal(sum_e, approx=False)       # (N, 1, tile_rows, 128)

    # Weighted soft-label CE without materializing log_softmax:
    #   ce = log_sum * sum_c(t) - sum_c(t * shifted)
    ce = log_sum * jnp.sum(t, axis=1) - jnp.sum(t * x, axis=1)
    if w_diff != 0.0:
        ce = (w_sum + w_diff * (t[:, 0] - t[:, 1])) * ce
    # else: constant weight factor (w0 == w1) is applied in the host epilogue.
    out_ref[0, 0] += _fold8(ce)

    # Per-channel Dice partial sums (intersection, denominator).
    for c in range(n_channels):
        sm_c = e[:, c] * inv[:, 0]                 # softmax channel c
        t_c = t[:, c]
        out_ref[0, 1 + c] += _fold8(sm_c * t_c)
        denom_c = sm_c + t_c
        if needs_mask:
            denom_c = jnp.where(mask, denom_c, 0.0)   # pad/garbage would add 1/C
        out_ref[0, 1 + n_channels + c] += _fold8(denom_c)


def combined_loss(inputs, targets, *, n_split=None, target_block_bytes=None,
                  vmem_limit_bytes=None):
    """inputs: NCHW logits, targets: NCHW soft labels (any float dtype).

    Returns (total, [8*dice, 5*wce]) matching the PyTorch Combined_Loss forward.
    """
    N, C, H, W = inputs.shape
    assert targets.shape == (N, C, H, W)
    assert C >= 2, "weighted CE uses channels 0 and 1"
    HW = H * W

    cfg = _chip_defaults()
    if n_split is None:
        n_split = cfg["n_split"]
    if target_block_bytes is None:
        target_block_bytes = cfg["block_bytes"]
    if vmem_limit_bytes is None:
        vmem_limit_bytes = cfg["vmem_limit"]

    rows = pl.cdiv(HW, _LANES)
    x = inputs.reshape(N, C, HW)
    t = targets.reshape(N, C, HW)
    if HW % _LANES != 0 or rows < _SUBLANES:
        # TODO(synk): only hit for tiny inputs or H*W not a multiple of 128; large
        # 128-aligned images stream straight from HBM with no copy (no jnp.pad).
        rows = max(rows, _SUBLANES)
        pad = ((0, 0), (0, 0), (0, rows * _LANES - HW))
        x = jnp.pad(x, pad)
        t = jnp.pad(t, pad)
    x = x.reshape(N, C, rows, _LANES)
    t = t.reshape(N, C, rows, _LANES)

    # Tile sizing: target ~block_bytes of f32 per input block, capped by an explicit
    # VMEM budget (2-deep pipeline buffers in HBM dtype + ~4 live f32 block temps).
    x_isz = x.dtype.itemsize
    t_isz = t.dtype.itemsize
    row_f32 = N * C * _LANES * 4
    row_live = 2 * N * C * _LANES * (x_isz + t_isz) + 4 * row_f32
    tr = min(target_block_bytes // row_f32, int(vmem_limit_bytes * 0.7) // row_live)
    tile_rows = max(_SUBLANES, (tr // _SUBLANES) * _SUBLANES)
    tile_rows = min(tile_rows, (rows // _SUBLANES) * _SUBLANES)
    # TODO(synk): for very large N*C, also tile the batch axis so blocks stay near
    # target_block_bytes instead of clamping tile_rows to 8.

    total_tiles = pl.cdiv(rows, tile_rows)
    n_split = max(1, min(n_split, total_tiles))
    ntps = pl.cdiv(total_tiles, n_split)          # tiles per split
    # Mask only when the grid coverage is not exactly the valid pixel count.
    needs_mask = (n_split * ntps * tile_rows * _LANES != HW)

    n_out = 2 * C + 1
    kernel = functools.partial(
        _combined_loss_kernel, n_channels=C, tile_rows=tile_rows,
        n_tiles_per_split=ntps, hw_valid=HW, needs_mask=needs_mask,
        w_sum=_W_SUM, w_diff=_W_DIFF)

    def in_map(p, j):
        # Clamp so an uneven split never produces a fully out-of-bounds block; the
        # duplicate tile's contributions are zeroed by the in-kernel mask.
        tile = jnp.minimum(p * ntps + j, total_tiles - 1)
        return (0, 0, tile, 0)

    partials = pl.pallas_call(
        kernel,
        out_shape=jax.ShapeDtypeStruct((n_split, n_out, _SUBLANES, _LANES), jnp.float32),
        grid_spec=pltpu.PrefetchScalarGridSpec(
            num_scalar_prefetch=0,
            grid=(n_split, ntps),
            in_specs=[
                pl.BlockSpec((N, C, tile_rows, _LANES), in_map),
                pl.BlockSpec((N, C, tile_rows, _LANES), in_map),
            ],
            out_specs=pl.BlockSpec((1, n_out, _SUBLANES, _LANES),
                                   lambda p, j: (p, 0, 0, 0)),
        ),
        compiler_params=pltpu.CompilerParams(
            dimension_semantics=("parallel", "arbitrary"),
            vmem_limit_bytes=vmem_limit_bytes),
    )(x, t)

    # Tiny host-side epilogue: reduce the (8,128) vector accumulators to scalars.
    sums = jnp.sum(partials, axis=(0, 2, 3))       # (2C+1,)
    wce_sum = sums[0]
    if _W_DIFF == 0.0:
        wce_sum = wce_sum * _W_SUM                 # constant-folded wfac
    inter = sums[1:1 + C]
    denom = sums[1 + C:1 + 2 * C]
    dice = jnp.sum(1.0 - (2.0 * inter + SMOOTH) / (denom + SMOOTH))
    wce = wce_sum / (N * C * H * W)
    dice_term = 8.0 * dice
    wce_term = 5.0 * wce
    return dice_term + wce_term, [dice_term, wce_term]


def _reference(inputs, targets):
    x = inputs.astype(jnp.float32)
    t = targets.astype(jnp.float32)
    logsm = jax.nn.log_softmax(x, axis=1)
    sm = jnp.exp(logsm)
    ce = -jnp.sum(t * logsm, axis=1)                 # (N, H, W)
    t0, t1 = t[:, 0], t[:, 1]
    xw = (t0 * ce * CE_W0 + (1 - t0) * ce * CE_W1
          + t1 * ce * CE_W1 + (1 - t1) * ce * CE_W0)
    wce = xw.sum() / x.size
    dice = 0.0
    for c in range(x.shape[1]):
        inter = jnp.sum(sm[:, c] * t[:, c])
        dice = dice + (1.0 - (2.0 * inter + SMOOTH)
                       / (jnp.sum(sm[:, c] + t[:, c]) + SMOOTH))
    return 8.0 * dice + 5.0 * wce, 8.0 * dice, 5.0 * wce


if __name__ == "__main__":
    key = jax.random.PRNGKey(0)
    k1, k2 = jax.random.split(key)
    N, C, H, W = 2, 4, 16, 16

    inputs = jax.random.normal(k1, (N, C, H, W), dtype=jnp.float32)
    classes = jax.random.randint(k2, (N, H, W), 0, C)
    targets = jax.nn.one_hot(classes, C, dtype=jnp.float32)        # (N, H, W, C)
    targets = jnp.transpose(targets, (0, 3, 1, 2))                 # NCHW

    total, (dice_term, wce_term) = combined_loss(inputs, targets)
    jax.block_until_ready(total)

    ref_total, ref_dice, ref_wce = _reference(inputs, targets)
    assert jnp.allclose(total, ref_total, rtol=1e-4, atol=1e-4), (total, ref_total)
    assert jnp.allclose(dice_term, ref_dice, rtol=1e-4, atol=1e-4)
    assert jnp.allclose(wce_term, ref_wce, rtol=1e-4, atol=1e-4)

    print("KERNEL_OK")
</pallas_src>

<mosaic_0001>
module attributes {stable_mosaic.version = 11 : i64} {
  func.func @_combined_loss_kernel(%arg0: i32, %arg1: i32, %arg2: memref<2x4x8x128xf32, #tpu.memory_space<vmem>>, %arg3: memref<2x4x8x128xf32, #tpu.memory_space<vmem>>, %arg4: memref<1x9x8x128xf32, #tpu.memory_space<vmem>>) attributes {dimension_semantics = [#tpu.dimension_semantics<parallel>, #tpu.dimension_semantics<arbitrary>], iteration_bounds = array<i64: 1, 1>, scalar_prefetch = 0 : i64, scratch_operands = 0 : i64, tpu.core_type = #tpu.core_type<tc>, window_params = [{transform_indices = @transform_0, window_bounds = array<i64: 2, 4, 8, 128>}, {transform_indices = @transform_1, window_bounds = array<i64: 2, 4, 8, 128>}, {transform_indices = @transform_2, window_bounds = array<i64: 1, 9, 8, 128>}]} {
    %c0_i32 = arith.constant 0 : i32
    %0 = arith.cmpi eq, %arg1, %c0_i32 : i32
    %1 = arith.extui %0 : i1 to i32
    %c0_i32_0 = arith.constant 0 : i32
    %2 = arith.cmpi ne, %1, %c0_i32_0 : i32
    scf.if %2 {
      %cst_90 = arith.constant 0.000000e+00 : f32
      %151 = vector.broadcast %cst_90 : f32 to vector<1x9x8x128xf32>
      %c0_91 = arith.constant 0 : index
      %c0_92 = arith.constant 0 : index
      %c0_93 = arith.constant 0 : index
      %c0_94 = arith.constant 0 : index
      %152 = vector.load %arg4[%c0_91, %c0_92, %c0_93, %c0_94] : memref<1x9x8x128xf32, #tpu.memory_space<vmem>>, vector<1x9x8x128xf32>
      tpu.vector_store %arg4[%c0_91, %c0_92, %c0_93, %c0_94], %151 {strides = array<i32>} : memref<1x9x8x128xf32, #tpu.memory_space<vmem>>, vector<1x9x8x128xf32>,
    } else {
    }
    %c0 = arith.constant 0 : index
    %c0_1 = arith.constant 0 : index
    %c0_2 = arith.constant 0 : index
    %c0_3 = arith.constant 0 : index
    %3 = vector.load %arg2[%c0, %c0_1, %c0_2, %c0_3] : memref<2x4x8x128xf32, #tpu.memory_space<vmem>>, vector<2x4x8x128xf32>
    %c0_4 = arith.constant 0 : index
    %c0_5 = arith.constant 0 : index
    %c0_6 = arith.constant 0 : index
    %c0_7 = arith.constant 0 : index
    %4 = vector.load %arg3[%c0_4, %c0_5, %c0_6, %c0_7] : memref<2x4x8x128xf32, #tpu.memory_space<vmem>>, vector<2x4x8x128xf32>
    %c1_i32 = arith.constant 1 : i32
    %5 = arith.muli %arg0, %c1_i32 : i32
    %6 = arith.addi %5, %arg1 : i32
    %c8_i32 = arith.constant 8 : i32
    %7 = arith.muli %6, %c8_i32 : i32
    %8 = tpu.iota {dimensions = array<i32: 0>} : vector<8x128xi32>
    %9 = tpu.iota {dimensions = array<i32: 1>} : vector<8x128xi32>
    %10 = vector.broadcast %7 : i32 to vector<8x128xi32>
    %11 = arith.addi %10, %8 : vector<8x128xi32>
    %c128_i32 = arith.constant 128 : i32
    %12 = vector.broadcast %c128_i32 : i32 to vector<8x128xi32>
    %13 = arith.muli %11, %12 : vector<8x128xi32>
    %14 = arith.addi %13, %9 : vector<8x128xi32>
    %c256_i32 = arith.constant 256 : i32
    %15 = vector.broadcast %c256_i32 : i32 to vector<8x128xi32>
    %16 = arith.cmpi slt, %14, %15 : vector<8x128xi32>
    %cst = arith.constant 0.000000e+00 : f32
    %17 = vector.shape_cast %16 : vector<8x128xi1> to vector<1x1x8x128xi1>
    %18 = vector.broadcast %17 : vector<1x1x8x128xi1> to vector<2x4x8x128xi1>
    %19 = vector.broadcast %cst : f32 to vector<2x4x8x128xf32>
    %20 = arith.select %18, %3, %19 : vector<2x4x8x128xi1>, vector<2x4x8x128xf32>
    %cst_8 = arith.constant 0.000000e+00 : f32
    %21 = vector.shape_cast %16 : vector<8x128xi1> to vector<1x1x8x128xi1>
    %22 = vector.broadcast %21 : vector<1x1x8x128xi1> to vector<2x4x8x128xi1>
    %23 = vector.broadcast %cst_8 : f32 to vector<2x4x8x128xf32>
    %24 = arith.select %22, %4, %23 : vector<2x4x8x128xi1>, vector<2x4x8x128xf32>
    %cst_9 = arith.constant dense<0xFF800000> : vector<2x8x128xf32>
    %25 = vector.multi_reduction <maximumf>, %20, %cst_9 [1] : vector<2x4x8x128xf32> to vector<2x8x128xf32>
    %26 = vector.shape_cast %25 : vector<2x8x128xf32> to vector<2x1x8x128xf32>
    %27 = vector.broadcast %26 : vector<2x1x8x128xf32> to vector<2x4x8x128xf32>
    %28 = arith.subf %20, %27 : vector<2x4x8x128xf32>
    %29 = math.exp %28 : vector<2x4x8x128xf32>
    %cst_10 = arith.constant dense<0.000000e+00> : vector<2x8x128xf32>
    %30 = vector.multi_reduction <add>, %29, %cst_10 [1] : vector<2x4x8x128xf32> to vector<2x8x128xf32>
    %31 = vector.shape_cast %30 : vector<2x8x128xf32> to vector<2x1x8x128xf32>
    %32 = math.log %31 : vector<2x1x8x128xf32>
    %33 = vector.shape_cast %32 : vector<2x1x8x128xf32> to vector<2x8x128xf32>
    %34 = tpu.reciprocal %31 : vector<2x1x8x128xf32> -> vector<2x1x8x128xf32>
    %cst_11 = arith.constant dense<0.000000e+00> : vector<2x8x128xf32>
    %35 = vector.multi_reduction <add>, %24, %cst_11 [1] : vector<2x4x8x128xf32> to vector<2x8x128xf32>
    %36 = arith.mulf %33, %35 : vector<2x8x128xf32>
    %37 = arith.mulf %24, %28 : vector<2x4x8x128xf32>
    %cst_12 = arith.constant dense<0.000000e+00> : vector<2x8x128xf32>
    %38 = vector.multi_reduction <add>, %37, %cst_12 [1] : vector<2x4x8x128xf32> to vector<2x8x128xf32>
    %39 = arith.subf %36, %38 : vector<2x8x128xf32>
    %c0_13 = arith.constant 0 : index
    %c0_14 = arith.constant 0 : index
    %c0_15 = arith.constant 0 : index
    %c0_16 = arith.constant 0 : index
    %40 = vector.load %arg4[%c0_13, %c0_14, %c0_15, %c0_16] : memref<1x9x8x128xf32, #tpu.memory_space<vmem>>, vector<1x1x8x128xf32>
    %41 = vector.shape_cast %40 : vector<1x1x8x128xf32> to vector<8x128xf32>
    %cst_17 = arith.constant dense<0.000000e+00> : vector<8x128xf32>
    %42 = vector.multi_reduction <add>, %39, %cst_17 [0] : vector<2x8x128xf32> to vector<8x128xf32>
    %43 = arith.addf %41, %42 : vector<8x128xf32>
    %c0_18 = arith.constant 0 : index
    %c0_19 = arith.constant 0 : index
    %c0_20 = arith.constant 0 : index
    %c0_21 = arith.constant 0 : index
    %44 = vector.load %arg4[%c0_18, %c0_19, %c0_20, %c0_21] : memref<1x9x8x128xf32, #tpu.memory_space<vmem>>, vector<1x1x8x128xf32>
    %45 = vector.shape_cast %44 : vector<1x1x8x128xf32> to vector<8x128xf32>
    %46 = vector.shape_cast %43 : vector<8x128xf32> to vector<1x1x8x128xf32>
    tpu.vector_store %arg4[%c0_18, %c0_19, %c0_20, %c0_21], %46 {strides = array<i32>} : memref<1x9x8x128xf32, #tpu.memory_space<vmem>>, vector<1x1x8x128xf32>,
    %47 = vector.extract_strided_slice %29 {offsets = [0, 0, 0, 0], sizes = [2, 1, 8, 128], strides = [1, 1, 1, 1]} : vector<2x4x8x128xf32> to vector<2x1x8x128xf32>
    %48 = vector.shape_cast %47 : vector<2x1x8x128xf32> to vector<2x8x128xf32>
    %49 = vector.shape_cast %34 : vector<2x1x8x128xf32> to vector<2x8x128xf32>
    %50 = arith.mulf %48, %49 : vector<2x8x128xf32>
    %51 = vector.extract_strided_slice %24 {offsets = [0, 0, 0, 0], sizes = [2, 1, 8, 128], strides = [1, 1, 1, 1]} : vector<2x4x8x128xf32> to vector<2x1x8x128xf32>
    %52 = vector.shape_cast %51 : vector<2x1x8x128xf32> to vector<2x8x128xf32>
    %c0_22 = arith.constant 0 : index
    %c1 = arith.constant 1 : index
    %c0_23 = arith.constant 0 : index
    %c0_24 = arith.constant 0 : index
    %53 = vector.load %arg4[%c0_22, %c1, %c0_23, %c0_24] : memref<1x9x8x128xf32, #tpu.memory_space<vmem>>, vector<1x1x8x128xf32>
    %54 = vector.shape_cast %53 : vector<1x1x8x128xf32> to vector<8x128xf32>
    %55 = arith.mulf %50, %52 : vector<2x8x128xf32>
    %cst_25 = arith.constant dense<0.000000e+00> : vector<8x128xf32>
    %56 = vector.multi_reduction <add>, %55, %cst_25 [0] : vector<2x8x128xf32> to vector<8x128xf32>
    %57 = arith.addf %54, %56 : vector<8x128xf32>
    %c0_26 = arith.constant 0 : index
    %c1_27 = arith.constant 1 : index
    %c0_28 = arith.constant 0 : index
    %c0_29 = arith.constant 0 : index
    %58 = vector.load %arg4[%c0_26, %c1_27, %c0_28, %c0_29] : memref<1x9x8x128xf32, #tpu.memory_space<vmem>>, vector<1x1x8x128xf32>
    %59 = vector.shape_cast %58 : vector<1x1x8x128xf32> to vector<8x128xf32>
    %60 = vector.shape_cast %57 : vector<8x128xf32> to vector<1x1x8x128xf32>
    tpu.vector_store %arg4[%c0_26, %c1_27, %c0_28, %c0_29], %60 {strides = array<i32>} : memref<1x9x8x128xf32, #tpu.memory_space<vmem>>, vector<1x1x8x128xf32>,
    %61 = arith.addf %50, %52 : vector<2x8x128xf32>
    %cst_30 = arith.constant 0.000000e+00 : f32
    %62 = vector.shape_cast %16 : vector<8x128xi1> to vector<1x8x128xi1>
    %63 = vector.broadcast %62 : vector<1x8x128xi1> to vector<2x8x128xi1>
    %64 = vector.broadcast %cst_30 : f32 to vector<2x8x128xf32>
    %65 = arith.select %63, %61, %64 : vector<2x8x128xi1>, vector<2x8x128xf32>
    %c0_31 = arith.constant 0 : index
    %c5 = arith.constant 5 : index
    %c0_32 = arith.constant 0 : index
    %c0_33 = arith.constant 0 : index
    %66 = vector.load %arg4[%c0_31, %c5, %c0_32, %c0_33] : memref<1x9x8x128xf32, #tpu.memory_space<vmem>>, vector<1x1x8x128xf32>
    %67 = vector.shape_cast %66 : vector<1x1x8x128xf32> to vector<8x128xf32>
    %cst_34 = arith.constant dense<0.000000e+00> : vector<8x128xf32>
    %68 = vector.multi_reduction <add>, %65, %cst_34 [0] : vector<2x8x128xf32> to vector<8x128xf32>
    %69 = arith.addf %67, %68 : vector<8x128xf32>
    %c0_35 = arith.constant 0 : index
    %c5_36 = arith.constant 5 : index
    %c0_37 = arith.constant 0 : index
    %c0_38 = arith.constant 0 : index
    %70 = vector.load %arg4[%c0_35, %c5_36, %c0_37, %c0_38] : memref<1x9x8x128xf32, #tpu.memory_space<vmem>>, vector<1x1x8x128xf32>
    %71 = vector.shape_cast %70 : vector<1x1x8x128xf32> to vector<8x128xf32>
    %72 = vector.shape_cast %69 : vector<8x128xf32> to vector<1x1x8x128xf32>
    tpu.vector_store %arg4[%c0_35, %c5_36, %c0_37, %c0_38], %72 {strides = array<i32>} : memref<1x9x8x128xf32, #tpu.memory_space<vmem>>, vector<1x1x8x128xf32>,
    %73 = vector.extract_strided_slice %29 {offsets = [0, 1, 0, 0], sizes = [2, 1, 8, 128], strides = [1, 1, 1, 1]} : vector<2x4x8x128xf32> to vector<2x1x8x128xf32>
    %74 = vector.shape_cast %73 : vector<2x1x8x128xf32> to vector<2x8x128xf32>
    %75 = vector.shape_cast %34 : vector<2x1x8x128xf32> to vector<2x8x128xf32>
    %76 = arith.mulf %74, %75 : vector<2x8x128xf32>
    %77 = vector.extract_strided_slice %24 {offsets = [0, 1, 0, 0], sizes = [2, 1, 8, 128], strides = [1, 1, 1, 1]} : vector<2x4x8x128xf32> to vector<2x1x8x128xf32>
    %78 = vector.shape_cast %77 : vector<2x1x8x128xf32> to vector<2x8x128xf32>
    %c0_39 = arith.constant 0 : index
    %c2 = arith.constant 2 : index
    %c0_40 = arith.constant 0 : index
    %c0_41 = arith.constant 0 : index
    %79 = vector.load %arg4[%c0_39, %c2, %c0_40, %c0_41] : memref<1x9x8x128xf32, #tpu.memory_space<vmem>>, vector<1x1x8x128xf32>
    %80 = vector.shape_cast %79 : vector<1x1x8x128xf32> to vector<8x128xf32>
    %81 = arith.mulf %76, %78 : vector<2x8x128xf32>
    %cst_42 = arith.constant dense<0.000000e+00> : vector<8x128xf32>
    %82 = vector.multi_reduction <add>, %81, %cst_42 [0] : vector<2x8x128xf32> to vector<8x128xf32>
    %83 = arith.addf %80, %82 : vector<8x128xf32>
    %c0_43 = arith.constant 0 : index
    %c2_44 = arith.constant 2 : index
    %c0_45 = arith.constant 0 : index
    %c0_46 = arith.constant 0 : index
    %84 = vector.load %arg4[%c0_43, %c2_44, %c0_45, %c0_46] : memref<1x9x8x128xf32, #tpu.memory_space<vmem>>, vector<1x1x8x128xf32>
    %85 = vector.shape_cast %84 : vector<1x1x8x128xf32> to vector<8x128xf32>
    %86 = vector.shape_cast %83 : vector<8x128xf32> to vector<1x1x8x128xf32>
    tpu.vector_store %arg4[%c0_43, %c2_44, %c0_45, %c0_46], %86 {strides = array<i32>} : memref<1x9x8x128xf32, #tpu.memory_space<vmem>>, vector<1x1x8x128xf32>,
    %87 = arith.addf %76, %78 : vector<2x8x128xf32>
    %cst_47 = arith.constant 0.000000e+00 : f32
    %88 = vector.shape_cast %16 : vector<8x128xi1> to vector<1x8x128xi1>
    %89 = vector.broadcast %88 : vector<1x8x128xi1> to vector<2x8x128xi1>
    %90 = vector.broadcast %cst_47 : f32 to vector<2x8x128xf32>
    %91 = arith.select %89, %87, %90 : vector<2x8x128xi1>, vector<2x8x128xf32>
    %c0_48 = arith.constant 0 : index
    %c6 = arith.constant 6 : index
    %c0_49 = arith.constant 0 : index
    %c0_50 = arith.constant 0 : index
    %92 = vector.load %arg4[%c0_48, %c6, %c0_49, %c0_50] : memref<1x9x8x128xf32, #tpu.memory_space<vmem>>, vector<1x1x8x128xf32>
    %93 = vector.shape_cast %92 : vector<1x1x8x128xf32> to vector<8x128xf32>
    %cst_51 = arith.constant dense<0.000000e+00> : vector<8x128xf32>
    %94 = vector.multi_reduction <add>, %91, %cst_51 [0] : vector<2x8x128xf32> to vector<8x128xf32>
    %95 = arith.addf %93, %94 : vector<8x128xf32>
    %c0_52 = arith.constant 0 : index
    %c6_53 = arith.constant 6 : index
    %c0_54 = arith.constant 0 : index
    %c0_55 = arith.constant 0 : index
    %96 = vector.load %arg4[%c0_52, %c6_53, %c0_54, %c0_55] : memref<1x9x8x128xf32, #tpu.memory_space<vmem>>, vector<1x1x8x128xf32>
    %97 = vector.shape_cast %96 : vector<1x1x8x128xf32> to vector<8x128xf32>
    %98 = vector.shape_cast %95 : vector<8x128xf32> to vector<1x1x8x128xf32>
    tpu.vector_store %arg4[%c0_52, %c6_53, %c0_54, %c0_55], %98 {strides = array<i32>} : memref<1x9x8x128xf32, #tpu.memory_space<vmem>>, vector<1x1x8x128xf32>,
    %99 = vector.extract_strided_slice %29 {offsets = [0, 2, 0, 0], sizes = [2, 1, 8, 128], strides = [1, 1, 1, 1]} : vector<2x4x8x128xf32> to vector<2x1x8x128xf32>
    %100 = vector.shape_cast %99 : vector<2x1x8x128xf32> to vector<2x8x128xf32>
    %101 = vector.shape_cast %34 : vector<2x1x8x128xf32> to vector<2x8x128xf32>
    %102 = arith.mulf %100, %101 : vector<2x8x128xf32>
    %103 = vector.extract_strided_slice %24 {offsets = [0, 2, 0, 0], sizes = [2, 1, 8, 128], strides = [1, 1, 1, 1]} : vector<2x4x8x128xf32> to vector<2x1x8x128xf32>
    %104 = vector.shape_cast %103 : vector<2x1x8x128xf32> to vector<2x8x128xf32>
    %c0_56 = arith.constant 0 : index
    %c3 = arith.constant 3 : index
    %c0_57 = arith.constant 0 : index
    %c0_58 = arith.constant 0 : index
    %105 = vector.load %arg4[%c0_56, %c3, %c0_57, %c0_58] : memref<1x9x8x128xf32, #tpu.memory_space<vmem>>, vector<1x1x8x128xf32>
    %106 = vector.shape_cast %105 : vector<1x1x8x128xf32> to vector<8x128xf32>
    %107 = arith.mulf %102, %104 : vector<2x8x128xf32>
    %cst_59 = arith.constant dense<0.000000e+00> : vector<8x128xf32>
    %108 = vector.multi_reduction <add>, %107, %cst_59 [0] : vector<2x8x128xf32> to vector<8x128xf32>
    %109 = arith.addf %106, %108 : vector<8x128xf32>
    %c0_60 = arith.constant 0 : index
    %c3_61 = arith.constant 3 : index
    %c0_62 = arith.constant 0 : index
    %c0_63 = arith.constant 0 : index
    %110 = vector.load %arg4[%c0_60, %c3_61, %c0_62, %c0_63] : memref<1x9x8x128xf32, #tpu.memory_space<vmem>>, vector<1x1x8x128xf32>
    %111 = vector.shape_cast %110 : vector<1x1x8x128xf32> to vector<8x128xf32>
    %112 = vector.shape_cast %109 : vector<8x128xf32> to vector<1x1x8x128xf32>
    tpu.vector_store %arg4[%c0_60, %c3_61, %c0_62, %c0_63], %112 {strides = array<i32>} : memref<1x9x8x128xf32, #tpu.memory_space<vmem>>, vector<1x1x8x128xf32>,
    %113 = arith.addf %102, %104 : vector<2x8x128xf32>
    %cst_64 = arith.constant 0.000000e+00 : f32
    %114 = vector.shape_cast %16 : vector<8x128xi1> to vector<1x8x128xi1>
    %115 = vector.broadcast %114 : vector<1x8x128xi1> to vector<2x8x128xi1>
    %116 = vector.broadcast %cst_64 : f32 to vector<2x8x128xf32>
    %117 = arith.select %115, %113, %116 : vector<2x8x128xi1>, vector<2x8x128xf32>
    %c0_65 = arith.constant 0 : index
    %c7 = arith.constant 7 : index
    %c0_66 = arith.constant 0 : index
    %c0_67 = arith.constant 0 : index
    %118 = vector.load %arg4[%c0_65, %c7, %c0_66, %c0_67] : memref<1x9x8x128xf32, #tpu.memory_space<vmem>>, vector<1x1x8x128xf32>
    %119 = vector.shape_cast %118 : vector<1x1x8x128xf32> to vector<8x128xf32>
    %cst_68 = arith.constant dense<0.000000e+00> : vector<8x128xf32>
    %120 = vector.multi_reduction <add>, %117, %cst_68 [0] : vector<2x8x128xf32> to vector<8x128xf32>
    %121 = arith.addf %119, %120 : vector<8x128xf32>
    %c0_69 = arith.constant 0 : index
    %c7_70 = arith.constant 7 : index
    %c0_71 = arith.constant 0 : index
    %c0_72 = arith.constant 0 : index
    %122 = vector.load %arg4[%c0_69, %c7_70, %c0_71, %c0_72] : memref<1x9x8x128xf32, #tpu.memory_space<vmem>>, vector<1x1x8x128xf32>
    %123 = vector.shape_cast %122 : vector<1x1x8x128xf32> to vector<8x128xf32>
    %124 = vector.shape_cast %121 : vector<8x128xf32> to vector<1x1x8x128xf32>
    tpu.vector_store %arg4[%c0_69, %c7_70, %c0_71, %c0_72], %124 {strides = array<i32>} : memref<1x9x8x128xf32, #tpu.memory_space<vmem>>, vector<1x1x8x128xf32>,
    %125 = vector.extract_strided_slice %29 {offsets = [0, 3, 0, 0], sizes = [2, 1, 8, 128], strides = [1, 1, 1, 1]} : vector<2x4x8x128xf32> to vector<2x1x8x128xf32>
    %126 = vector.shape_cast %125 : vector<2x1x8x128xf32> to vector<2x8x128xf32>
    %127 = vector.shape_cast %34 : vector<2x1x8x128xf32> to vector<2x8x128xf32>
    %128 = arith.mulf %126, %127 : vector<2x8x128xf32>
    %129 = vector.extract_strided_slice %24 {offsets = [0, 3, 0, 0], sizes = [2, 1, 8, 128], strides = [1, 1, 1, 1]} : vector<2x4x8x128xf32> to vector<2x1x8x128xf32>
    %130 = vector.shape_cast %129 : vector<2x1x8x128xf32> to vector<2x8x128xf32>
    %c0_73 = arith.constant 0 : index
    %c4 = arith.constant 4 : index
    %c0_74 = arith.constant 0 : index
    %c0_75 = arith.constant 0 : index
    %131 = vector.load %arg4[%c0_73, %c4, %c0_74, %c0_75] : memref<1x9x8x128xf32, #tpu.memory_space<vmem>>, vector<1x1x8x128xf32>
    %132 = vector.shape_cast %131 : vector<1x1x8x128xf32> to vector<8x128xf32>
    %133 = arith.mulf %128, %130 : vector<2x8x128xf32>
    %cst_76 = arith.constant dense<0.000000e+00> : vector<8x128xf32>
    %134 = vector.multi_reduction <add>, %133, %cst_76 [0] : vector<2x8x128xf32> to vector<8x128xf32>
    %135 = arith.addf %132, %134 : vector<8x128xf32>
    %c0_77 = arith.constant 0 : index
    %c4_78 = arith.constant 4 : index
    %c0_79 = arith.constant 0 : index
    %c0_80 = arith.constant 0 : index
    %136 = vector.load %arg4[%c0_77, %c4_78, %c0_79, %c0_80] : memref<1x9x8x128xf32, #tpu.memory_space<vmem>>, vector<1x1x8x128xf32>
    %137 = vector.shape_cast %136 : vector<1x1x8x128xf32> to vector<8x128xf32>
    %138 = vector.shape_cast %135 : vector<8x128xf32> to vector<1x1x8x128xf32>
    tpu.vector_store %arg4[%c0_77, %c4_78, %c0_79, %c0_80], %138 {strides = array<i32>} : memref<1x9x8x128xf32, #tpu.memory_space<vmem>>, vector<1x1x8x128xf32>,
    %139 = arith.addf %128, %130 : vector<2x8x128xf32>
    %cst_81 = arith.constant 0.000000e+00 : f32
    %140 = vector.shape_cast %16 : vector<8x128xi1> to vector<1x8x128xi1>
    %141 = vector.broadcast %140 : vector<1x8x128xi1> to vector<2x8x128xi1>
    %142 = vector.broadcast %cst_81 : f32 to vector<2x8x128xf32>
    %143 = arith.select %141, %139, %142 : vector<2x8x128xi1>, vector<2x8x128xf32>
    %c0_82 = arith.constant 0 : index
    %c8 = arith.constant 8 : index
    %c0_83 = arith.constant 0 : index
    %c0_84 = arith.constant 0 : index
    %144 = vector.load %arg4[%c0_82, %c8, %c0_83, %c0_84] : memref<1x9x8x128xf32, #tpu.memory_space<vmem>>, vector<1x1x8x128xf32>
    %145 = vector.shape_cast %144 : vector<1x1x8x128xf32> to vector<8x128xf32>
    %cst_85 = arith.constant dense<0.000000e+00> : vector<8x128xf32>
    %146 = vector.multi_reduction <add>, %143, %cst_85 [0] : vector<2x8x128xf32> to vector<8x128xf32>
    %147 = arith.addf %145, %146 : vector<8x128xf32>
    %c0_86 = arith.constant 0 : index
    %c8_87 = arith.constant 8 : index
    %c0_88 = arith.constant 0 : index
    %c0_89 = arith.constant 0 : index
    %148 = vector.load %arg4[%c0_86, %c8_87, %c0_88, %c0_89] : memref<1x9x8x128xf32, #tpu.memory_space<vmem>>, vector<1x1x8x128xf32>
    %149 = vector.shape_cast %148 : vector<1x1x8x128xf32> to vector<8x128xf32>
    %150 = vector.shape_cast %147 : vector<8x128xf32> to vector<1x1x8x128xf32>
    tpu.vector_store %arg4[%c0_86, %c8_87, %c0_88, %c0_89], %150 {strides = array<i32>} : memref<1x9x8x128xf32, #tpu.memory_space<vmem>>, vector<1x1x8x128xf32>,
    return
  }
  func.func @transform_0(%arg0: i32, %arg1: i32) -> (i32, i32, i32, i32) {
    %c1_i32 = arith.constant 1 : i32
    %0 = arith.muli %arg0, %c1_i32 : i32
    %1 = arith.addi %0, %arg1 : i32
    %c0_i32 = arith.constant 0 : i32
    %2 = arith.minsi %1, %c0_i32 : i32
    %c0_i32_0 = arith.constant 0 : i32
    %c0_i32_1 = arith.constant 0 : i32
    %c0_i32_2 = arith.constant 0 : i32
    %c0_i32_3 = arith.constant 0 : i32
    return %c0_i32_0, %c0_i32_1, %2, %c0_i32_2 : i32, i32, i32, i32
  }
  func.func @transform_1(%arg0: i32, %arg1: i32) -> (i32, i32, i32, i32) {
    %c1_i32 = arith.constant 1 : i32
    %0 = arith.muli %arg0, %c1_i32 : i32
    %1 = arith.addi %0, %arg1 : i32
    %c0_i32 = arith.constant 0 : i32
    %2 = arith.minsi %1, %c0_i32 : i32
    %c0_i32_0 = arith.constant 0 : i32
    %c0_i32_1 = arith.constant 0 : i32
    %c0_i32_2 = arith.constant 0 : i32
    %c0_i32_3 = arith.constant 0 : i32
    return %c0_i32_0, %c0_i32_1, %2, %c0_i32_2 : i32, i32, i32, i32
  }
  func.func @transform_2(%arg0: i32, %arg1: i32) -> (i32, i32, i32, i32) {
    %c0_i32 = arith.constant 0 : i32
    %c0_i32_0 = arith.constant 0 : i32
    %c0_i32_1 = arith.constant 0 : i32
    %c0_i32_2 = arith.constant 0 : i32
    return %arg0, %c0_i32, %c0_i32_0, %c0_i32_1 : i32, i32, i32, i32
  }
}

</mosaic_0001>

<bundles_post_ra>
// kernel: tpu_custom_call.1
= control target key start
LH: loop header
LB: loop body
LE: loop exit
PB: predicated region body
PF: predicated region fallthrough
CT: control target
= control target key end

     0   :  { %7 = vsyncpa [#allocation3], 0  ;;  %s526_s0 = inlined_call_operand.hbm [shape: f32[2,4,8,128], index: 0, kind: input, shape index: {}]   ;;  %s527_s1 = inlined_call_operand.hbm [shape: f32[2,4,8,128], index: 1, kind: input, shape index: {}]   ;;  %s528_s2 = inlined_call_operand.hbm [shape: f32[1,9,8,128], index: 2, kind: output, shape index: {}]  }
   0x1   :  { %8 = vsyncpa [#allocation6], 0 }
   0x2   :  { %9 = vsyncpa [#allocation4], 0  ;;  %s380_s9 = smov [#allocation2]   ;;  %s308_s13 = scalar_lea.hbm %s526_s0, 1024 }
   0x3   :  { %s20_s10 = sshll.u32 %s380_s9, 4  ;;  %p309_p0 = scmp.ne.s32.totalorder %s526_s0, %s308_s13  ;;  %s21_s10 = int_to_ptr.vmem [resolvable:$true] %s20_s10 }
   0x4   :  { %p312_p1 = scmp.lt.u32.totalorder %s308_s13, %s526_s0 }
   0x6   :  { %p314_p2 = pnand %p312_p1, %p309_p0 }
   0x8   :  { %317 = shalt.err (!%p314_p2)
}
   0x9   :  { %s318_s18 = scalar_lea.vmem %s21_s10, 1024  ;;  %p323_p4 = scmp.lt.s32.totalorder %s21_s10, %s21_s10 }
   0xa   :  { %p319_p3 = scmp.ne.s32.totalorder %s21_s10, %s318_s18  ;;  %p324_p5 = scmp.lt.s32.totalorder %s318_s18, %s318_s18 }
   0xc   :  { %p325_p6 = por %p324_p5, %p323_p4 }
   0xe   :  { %p326_p7 = pnand %p325_p6, %p319_p3 }
  0x10   :  { %329 = shalt.err (!%p326_p7)
}
  0x11   :  { %s381_s19 = smov 128   ;;  %s382_s20 = smov 8  }
  0x12   :  { %26 = dma.hbm_to_vmem [thread:$0]  %s526_s0, 1024, %s21_s10, [#allocation3], %s381_s19, %s381_s19, %s382_s20  }
  0x13   :  { %s383_s23 = smov [#allocation5]   ;;  %s330_s27 = scalar_lea.hbm %s527_s1, 1024 }
  0x14   :  { %s37_s24 = sshll.u32 %s383_s23, 4  ;;  %p331_p8 = scmp.ne.s32.totalorder %s527_s1, %s330_s27  ;;  %s38_s24 = int_to_ptr.vmem [resolvable:$true] %s37_s24 }
  0x15   :  { %p334_p9 = scmp.lt.u32.totalorder %s330_s27, %s527_s1 }
  0x17   :  { %p336_p10 = pnand %p334_p9, %p331_p8 }
  0x19   :  { %339 = shalt.err (!%p336_p10)
}
  0x1a   :  { %s340_s4 = scalar_lea.vmem %s38_s24, 1024  ;;  %p345_p12 = scmp.lt.s32.totalorder %s38_s24, %s38_s24 }
  0x1b   :  { %p341_p11 = scmp.ne.s32.totalorder %s38_s24, %s340_s4  ;;  %p346_p13 = scmp.lt.s32.totalorder %s340_s4, %s340_s4 }
  0x1d   :  { %p347_p0 = por %p346_p13, %p345_p12 }
  0x1f   :  { %p348_p1 = pnand %p347_p0, %p341_p11 }
  0x21   :  { %351 = shalt.err (!%p348_p1)
}
  0x22   :  { %43 = dma.hbm_to_vmem [thread:$0]  %s527_s1, 1024, %s38_s24, [#allocation6], %s381_s19, %s381_s19, %s382_s20  }
  0x23   :  { %374 = dma.done.wait [#allocation3], 1024  }
  0x24   :  { %375 = vsyncadd [#allocation3], 4294966272 }
  0x25   :  { %376 = dma.done.wait [#allocation6], 1024  }
  0x26   :  { %377 = vsyncadd [#allocation6], 4294966272  ;;  %v87_v0 = vlaneseq  ;;  %v69_v5 = vld [vmem:[#allocation2] sm:$0xff]  ;;  %v70_v6 = vld [vmem:[#allocation2 + $0x8] sm:$0xff]  ;;  %s384_s1 = smov [#allocation7]  }
  0x27   :  { %v71_v7 = vld [vmem:[#allocation2 + $0x10] sm:$0xff]  ;;  %v72_v8 = vld [vmem:[#allocation2 + $0x18] sm:$0xff]  ;;  %v73_v9 = vld [vmem:[#allocation2 + $0x20] sm:$0xff]  ;;  %s261_s6 = sshll.u32 %s384_s1, 4  ;;  %s262_s6 = int_to_ptr.vmem [resolvable:$true] %s261_s6 }
  0x28   :  { %v88_v1 = vshrl.u32 %v87_v0, 7  ;;  %v90_v2 = vand.u32 127, %v87_v0  ;;  %v74_v10 = vld [vmem:[#allocation2 + $0x28] sm:$0xff]  ;;  %v75_v11 = vld [vmem:[#allocation2 + $0x30] sm:$0xff]  ;;  %v76_v12 = vld [vmem:[#allocation2 + $0x38] sm:$0xff]  ;;  %s352_s7 = scalar_lea.vmem %s262_s6, 1152  ;;  %p357_p3 = scmp.lt.s32.totalorder %s262_s6, %s262_s6 }
  0x29   :  { %v77_v45 = vld [vmem:[#allocation5] sm:$0xff]  ;;  %v78_v46 = vld [vmem:[#allocation5 + $0x8] sm:$0xff]  ;;  %v79_v57 = vld [vmem:[#allocation5 + $0x10] sm:$0xff]  ;;  %p353_p2 = scmp.ne.s32.totalorder %s262_s6, %s352_s7  ;;  %p358_p4 = scmp.lt.s32.totalorder %s352_s7, %s352_s7 }
  0x2a   :  { %v93_v3 = vmul.u32 128, %v88_v1  ;;  %v81_v50 = vld [vmem:[#allocation5 + $0x20] sm:$0xff]  ;;  %v82_v51 = vld [vmem:[#allocation5 + $0x28] sm:$0xff]  ;;  %v83_v0 = vld [vmem:[#allocation5 + $0x30] sm:$0xff] }
  0x2b   :  { %p359_p5 = por %p358_p4, %p357_p3 }
  0x2c   :  { %v430_v4 = vadd.s32 %v93_v3, %v90_v2 }
  0x2d   :  { %p360_p6 = pnand %p359_p5, %p353_p2 }
  0x2e   :  { %vm95_vm0 = vcmp.lt.s32.totalorder %v430_v4, 256 }
  0x2f   :  { %v98_v13 = vsel %vm95_vm0, %v69_v5, 0.0  ;;  %v99_v14 = vsel %vm95_vm0, %v70_v6, 0.0  ;;  %v100_v15 = vsel %vm95_vm0, %v71_v7, 0.0  ;;  %v101_v16 = vsel %vm95_vm0, %v72_v8, 0.0  ;;  %v80_v6 = vld [vmem:[#allocation5 + $0x18] sm:$0xff] }
  0x30   :  { %v102_v17 = vsel %vm95_vm0, %v73_v9, 0.0  ;;  %v114_v18 = vmax.f32 %v98_v13, %v100_v15  ;;  %v103_v19 = vsel %vm95_vm0, %v74_v10, 0.0  ;;  %v104_v20 = vsel %vm95_vm0, %v75_v11, 0.0 }
  0x31   :  { %v105_v21 = vsel %vm95_vm0, %v76_v12, 0.0  ;;  %v115_v22 = vmax.f32 %v99_v14, %v101_v16  ;;  %v117_v24 = vmax.f32 %v102_v17, %v104_v20  ;;  %v106_v53 = vsel %vm95_vm0, %v77_v45, 0.0  ;;  %v84_v12 = vld [vmem:[#allocation5 + $0x38] sm:$0xff] }
  0x32   :  { %v118_v25 = vmax.f32 %v103_v19, %v105_v21  ;;  %v107_v54 = vsel %vm95_vm0, %v78_v46, 0.0  ;;  %v463_v59 = vsel %vm95_vm0, %v81_v50, 0.0  ;;  %v467_v60 = vsel %vm95_vm0, %v82_v51, 0.0 }
  0x33   :  { %v116_v23 = vmax.f32 %v114_v18, %v115_v22  ;;  %v108_v3 = vsel %vm95_vm0, %v79_v57, 0.0  ;;  %v156_v7 = vadd.f32 %v107_v54, %v106_v53  ;;  %v112_v10 = vsel %vm95_vm0, %v83_v0, 0.0 }
  0x34   :  { %v119_v30 = vmax.f32 %v117_v24, %v118_v25 }
  0x35   :  { %v120_v26 = vsub.f32 %v98_v13, %v116_v23  ;;  %v121_v27 = vsub.f32 %v99_v14, %v116_v23  ;;  %v122_v28 = vsub.f32 %v100_v15, %v116_v23  ;;  %v449_v29 = vsub.f32 %v101_v16, %v116_v23 }
  0x36   :  { %v124_v34 = vsub.f32 %v102_v17, %v119_v30  ;;  %v125_v35 = vsub.f32 %v103_v19, %v119_v30  ;;  %v126_v36 = vsub.f32 %v104_v20, %v119_v30  ;;  %v451_v37 = vsub.f32 %v105_v21, %v119_v30 }
  0x37   :  { %v128_v31 = vmul.f32 1.442695, %v120_v26  ;;  %v130_v32 = vmul.f32 1.442695, %v121_v27  ;;  %v132_v33 = vmul.f32 1.442695, %v122_v28  ;;  %v164_v1 = vmul.f32 %v120_v26, %v106_v53 }
  0x38   :  { %v134_v38 = vmul.f32 1.442695, %v449_v29  ;;  %v136_v39 = vmul.f32 1.442695, %v124_v34  ;;  %v138_v40 = vmul.f32 1.442695, %v125_v35  ;;  %v165_v2 = vmul.f32 %v121_v27, %v107_v54 }
  0x39   :  { %284 = vpow2.f32 %v128_v31  ;;  %v140_v41 = vmul.f32 1.442695, %v126_v36  ;;  %v142_v42 = vmul.f32 1.442695, %v451_v37  ;;  %v168_v8 = vmul.f32 %v124_v34, %v463_v59 }
  0x3a   :  { %286 = vpow2.f32 %v130_v32  ;;  %v169_v9 = vmul.f32 %v125_v35, %v467_v60  ;;  %v166_v13 = vmul.f32 %v122_v28, %v108_v3  ;;  %v172_v14 = vadd.f32 %v165_v2, %v164_v1 }
  0x3b   :  { %288 = vpow2.f32 %v132_v33  ;;  %v478_v15 = vsel %vm95_vm0, %v80_v6, 0.0  ;;  %v159_v16 = vadd.f32 %v467_v60, %v463_v59  ;;  %v157_v17 = vadd.f32 %v156_v7, %v108_v3 }
  0x3c   :  { %290 = vpow2.f32 %v134_v38  ;;  %v170_v18 = vmul.f32 %v126_v36, %v112_v10  ;;  %v175_v19 = vadd.f32 %v169_v9, %v168_v8  ;;  %v113_v20 = vsel %vm95_vm0, %v84_v12, 0.0 }
  0x3d   :  { %292 = vpow2.f32 %v136_v39  ;;  %v167_v21 = vmul.f32 %v449_v29, %v478_v15  ;;  %v173_v22 = vadd.f32 %v172_v14, %v166_v13  ;;  %v158_v23 = vadd.f32 %v157_v17, %v478_v15 }
  0x3e   :  { %294 = vpow2.f32 %v138_v40  ;;  %v160_v24 = vadd.f32 %v159_v16, %v112_v10  ;;  %v171_v25 = vmul.f32 %v451_v37, %v113_v20  ;;  %v176_v26 = vadd.f32 %v175_v19, %v170_v18 }
  0x3f   :  { %296 = vpow2.f32 %v140_v41  ;;  %v174_v31 = vadd.f32 %v173_v22, %v167_v21 }
  0x40   :  { %298 = vpow2.f32 %v142_v42  ;;  %v161_v35 = vadd.f32 %v160_v24, %v113_v20  ;;  %v177_v38 = vadd.f32 %v176_v26, %v171_v25 }
  0x43   :  { %v285_v43 = vpop.eup %284 }
  0x44   :  { %v287_v44 = vpop.eup %286 }
  0x45   :  { %v289_v47 = vpop.eup %288  ;;  %v144_v48 = vadd.f32 %v287_v44, %v285_v43 }
  0x46   :  { %v291_v49 = vpop.eup %290 }
  0x47   :  { %v455_v52 = vpop.eup %292  ;;  %v145_v55 = vadd.f32 %v289_v47, %v144_v48 }
  0x48   :  { %v295_v56 = vpop.eup %294 }
  0x49   :  { %v297_v58 = vpop.eup %296  ;;  %v146_v61 = vadd.f32 %v291_v49, %v145_v55  ;;  %v147_v62 = vadd.f32 %v295_v56, %v455_v52 }
  0x4a   :  { %v299_v63 = vpop.eup %298 }
  0x4b   :  { %v148_v5 = vadd.f32 %v297_v58, %v147_v62  ;;  %300 = vlog2.f32 %v146_v61 }
  0x4c   :  { %302 = vrcp.f32 %v146_v61 }
  0x4d   :  { %v149_v11 = vadd.f32 %v299_v63, %v148_v5 }
  0x4f   :  { %304 = vlog2.f32 %v149_v11 }
  0x50   :  { %306 = vrcp.f32 %v149_v11 }
  0x55   :  { %v301_v27 = vpop.eup %300 }
  0x56   :  { %v303_v28 = vpop.eup %302  ;;  %v151_v30 = vmul.f32 0.6931472, %v301_v27 }
  0x57   :  { %v184_v32 = vmul.f32 %v303_v28, %v285_v43  ;;  %v202_v33 = vmul.f32 %v303_v28, %v287_v44  ;;  %v220_v34 = vmul.f32 %v303_v28, %v289_v47  ;;  %v238_v39 = vmul.f32 %v303_v28, %v291_v49 }
  0x58   :  { %v162_v36 = vmul.f32 %v158_v23, %v151_v30 }
  0x59   :  { %v305_v40 = vpop.eup %304  ;;  %v188_v29 = vmul.f32 %v184_v32, %v106_v53  ;;  %v193_v41 = vadd.f32 %v184_v32, %v106_v53  ;;  %v206_v42 = vmul.f32 %v202_v33, %v107_v54  ;;  %v211_v45 = vadd.f32 %v202_v33, %v107_v54 }
  0x5a   :  { %v307_v46 = vpop.eup %306  ;;  %v153_v48 = vmul.f32 0.6931472, %v305_v40  ;;  %v178_v37 = vsub.f32 %v162_v36, %v174_v31  ;;  %v224_v50 = vmul.f32 %v220_v34, %v108_v3  ;;  %v229_v51 = vadd.f32 %v220_v34, %v108_v3 }
  0x5b   :  { %v185_v55 = vmul.f32 %v307_v46, %v455_v52  ;;  %v195_v43 = vsel %vm95_vm0, %v193_v41, 0.0  ;;  %v203_v44 = vmul.f32 %v307_v46, %v295_v56  ;;  %v213_v47 = vsel %vm95_vm0, %v211_v45, 0.0 }
  0x5c   :  { %v163_v49 = vmul.f32 %v161_v35, %v153_v48  ;;  %v221_v57 = vmul.f32 %v307_v46, %v297_v58  ;;  %v231_v53 = vsel %vm95_vm0, %v229_v51, 0.0  ;;  %v239_v54 = vmul.f32 %v307_v46, %v299_v63 }
  0x5d   :  { %v189_v61 = vmul.f32 %v185_v55, %v463_v59  ;;  %v194_v62 = vadd.f32 %v185_v55, %v463_v59  ;;  %v207_v0 = vmul.f32 %v203_v44, %v467_v60  ;;  %v212_v52 = vadd.f32 %v203_v44, %v467_v60 }
  0x5e   :  { %v179_v1 = vsub.f32 %v163_v49, %v177_v38  ;;  %v225_v2 = vmul.f32 %v221_v57, %v112_v10  ;;  %v230_v56 = vadd.f32 %v221_v57, %v112_v10  ;;  %v242_v3 = vmul.f32 %v238_v39, %v478_v15 }
  0x5f   :  { %v190_v5 = vadd.f32 %v189_v61, %v188_v29  ;;  %v196_v58 = vsel %vm95_vm0, %v194_v62, 0.0  ;;  %v208_v6 = vadd.f32 %v207_v0, %v206_v42  ;;  %v214_v63 = vsel %vm95_vm0, %v212_v52, 0.0 }
  0x60   :  { %v181_v7 = vadd.f32 %v179_v1, %v178_v37  ;;  %v199_v8 = vadd.f32 %v196_v58, %v195_v43  ;;  %v217_v59 = vadd.f32 %v214_v63, %v213_v47  ;;  %v226_v9 = vadd.f32 %v225_v2, %v224_v50 }
  0x61   :  { %v232_v60 = vsel %vm95_vm0, %v230_v56, 0.0  ;;  %v243_v11 = vmul.f32 %v239_v54, %v113_v20  ;;  %192 = vst [vmem:[#allocation7 + $0x8] sm:$0xff] %v190_v5  ;;  %210 = vst [vmem:[#allocation7 + $0x10] sm:$0xff] %v208_v6  ;;  %v247_v13 = vadd.f32 %v238_v39, %v478_v15  ;;  %v248_v14 = vadd.f32 %v239_v54, %v113_v20 }
  0x62   :  { %v235_v10 = vadd.f32 %v232_v60, %v231_v53  ;;  %183 = vst [vmem:[#allocation7] sm:$0xff] %v181_v7  ;;  %201 = vst [vmem:[#allocation7 + $0x28] sm:$0xff] %v199_v8 }
  0x63   :  { %v244_v12 = vadd.f32 %v243_v11, %v242_v3  ;;  %219 = vst [vmem:[#allocation7 + $0x30] sm:$0xff] %v217_v59  ;;  %228 = vst [vmem:[#allocation7 + $0x18] sm:$0xff] %v226_v9  ;;  %v249_v16 = vsel %vm95_vm0, %v247_v13, 0.0  ;;  %v250_v17 = vsel %vm95_vm0, %v248_v14, 0.0 }
  0x64   :  { %v253_v18 = vadd.f32 %v250_v17, %v249_v16  ;;  %237 = vst [vmem:[#allocation7 + $0x38] sm:$0xff] %v235_v10 }
  0x65   :  { %246 = vst [vmem:[#allocation7 + $0x20] sm:$0xff] %v244_v12 }
  0x66   :  { %255 = vst [vmem:[#allocation7 + $0x40] sm:$0xff] %v253_v18 }
  0x67   :  { %363 = shalt.err (!%p360_p6)
}
  0x68   :  { %s364_s10 = scalar_lea.hbm %s528_s2, 1152 }
  0x69   :  { %p365_p7 = scmp.ne.s32.totalorder %s528_s2, %s364_s10  ;;  %p368_p8 = scmp.lt.u32.totalorder %s364_s10, %s528_s2 }
  0x6b   :  { %p370_p9 = pnand %p368_p8, %p365_p7 }
  0x6d   :  { %373 = shalt.err (!%p370_p9)
}
  0x6e   :  { %267 = dma.vmem_to_hbm [thread:$0]  %s262_s6, 1152, %s528_s2, [#allocation4], %s381_s19, %s381_s19, %s382_s20  }
  0x6f   :  { %378 = dma.done.wait [#allocation4], 1152  }
  0x70   :  { %379 = vsyncadd [#allocation4], 4294966144 }
  0x71   :  { %271 = vsyncpa [#allocation3], 1 }
  0x72   :  { %272 = vsyncpa [#allocation6], 1 }
  0x73   :  { %273 = vsyncpa [#allocation4], 1 }

</bundles_post_ra>
